<compile_context>
chip_gen: v5e
topology: v5e:2x2
jax: 0.10.0
libtpu: 0.0.40
codegen_flags: <defaults>
</compile_context>

<pallas_src>
import functools

import jax
import jax.numpy as jnp
from jax.experimental import pallas as pl
from jax.experimental.pallas import tpu as pltpu


def _round_up(x, m):
    return ((x + m - 1) // m) * m


def _pad2d(arr, rows, cols):
    pr, pc = rows - arr.shape[0], cols - arr.shape[1]
    if pr == 0 and pc == 0:
        return arr
    return jnp.pad(arr, ((0, pr), (0, pc)))


def _choose_tk(K, max_tk=1024):
    """Reduction-axis tile: as large as possible (<= max_tk), evenly split."""
    kp128 = _round_up(K, 128)
    nblk = -(-kp128 // max_tk)
    tk = _round_up(-(-kp128 // nblk), 128)
    Kp = _round_up(K, tk)
    return tk, Kp


def _choose_tn(N, max_tn=512):
    """Lane-dense N tile; prefer >=2 N-blocks so v7x megacore has a parallel
    sub-grid even when M fits in a single tile."""
    Np = _round_up(N, 128)
    best = 128
    for cand in range(128, min(max_tn, Np) + 1, 128):
        if Np % cand == 0:
            best = cand
    if Np // best < 2:
        start = min(max_tn, (Np // 2) // 128 * 128)
        for cand in range(start, 127, -128):
            if Np % cand == 0:
                best = cand
                break
    return best, Np


# ----------------------------------------------------------------------------
# Pallas kernel: fused LoRA-linear  y = x @ W + xa @ B_scaled + bias  (+ ReLU)
# grid = (M/tm, N/tn, K/tk), K innermost (reduction axis).
# xa = x @ A is precomputed in the wrapper (tiny (M, r) matmul).
# ----------------------------------------------------------------------------
def _lora_linear_kernel(x_ref, w_ref, xa_ref, b_ref, bias_ref, o_ref,
                        acc_ref, *, apply_relu):
    k = pl.program_id(2)

    @pl.when(k == 0)
    def _():
        acc_ref[...] = jnp.zeros_like(acc_ref)

    acc_ref[...] += jnp.dot(x_ref[...], w_ref[...],
                            preferred_element_type=jnp.float32)      # (tm, tn) f32

    @pl.when(k == pl.num_programs(2) - 1)
    def _():
        # LoRA up-projection once per output tile, bf16 x bf16 -> f32 acc;
        # the LoRA scale was folded into B at construction time.
        lora = jnp.dot(xa_ref[...], b_ref[...],
                       preferred_element_type=jnp.float32)           # (tm, tn) f32
        y = acc_ref[...] + lora + bias_ref[...]                      # bias (1, tn)
        if apply_relu:
            y = jnp.maximum(y, 0.0)
        o_ref[...] = y.astype(o_ref.dtype)


def lora_linear(x, w_p, a_p, b_p, bias_p, *, n_logical, tn, tk,
                apply_relu, out_dtype, tm=512):
    """Fused PEFT (LoRA) linear layer on TPU via Pallas.

    x      : (M, K)           activations (any float dtype; cast to bf16)
    w_p    : (Kp, Np) bf16    frozen base weight, (in, out) layout, pre-padded
    a_p    : (Kp, r)  bf16    LoRA down-projection, pre-padded
    b_p    : (r, Np)  bf16    LoRA up-projection (scale folded in), pre-padded
    bias_p : (1, Np)  f32     pre-padded bias
    Returns (M, n_logical) in out_dtype.
    """
    M, K = x.shape
    Kp, Np = w_p.shape
    r = a_p.shape[1]
    assert K <= Kp and b_p.shape == (r, Np) and bias_p.shape == (1, Np)
    assert Np % tn == 0 and Kp % tk == 0

    tm = min(tm, _round_up(M, 8))
    Mp = _round_up(M, tm)

    x_p = _pad2d(x.astype(jnp.bfloat16), Mp, Kp)

    # Hoisted LoRA down-projection (M, r): done once, outside the (j, k) loops.
    xa_p = jnp.dot(x_p, a_p,
                   preferred_element_type=jnp.float32).astype(jnp.bfloat16)

    kernel = functools.partial(_lora_linear_kernel, apply_relu=apply_relu)

    out_p = pl.pallas_call(
        kernel,
        out_shape=jax.ShapeDtypeStruct((Mp, Np), out_dtype),
        grid_spec=pltpu.PrefetchScalarGridSpec(
            num_scalar_prefetch=0,
            grid=(Mp // tm, Np // tn, Kp // tk),
            in_specs=[
                pl.BlockSpec((tm, tk), lambda i, j, k: (i, k)),   # x
                pl.BlockSpec((tk, tn), lambda i, j, k: (k, j)),   # W
                pl.BlockSpec((tm, r),  lambda i, j, k: (i, 0)),   # x @ A (precomputed)
                pl.BlockSpec((r, tn),  lambda i, j, k: (0, j)),   # B (scaled)
                pl.BlockSpec((1, tn),  lambda i, j, k: (0, j)),   # bias
            ],
            out_specs=pl.BlockSpec((tm, tn), lambda i, j, k: (i, j)),
            scratch_shapes=[pltpu.VMEM((tm, tn), jnp.float32)],   # acc
        ),
        compiler_params=pltpu.CompilerParams(
            dimension_semantics=("parallel", "parallel", "arbitrary"),
            vmem_limit_bytes=48 * 1024 * 1024,
        ),
    )(x_p, w_p, xa_p, b_p, bias_p)

    return out_p[:M, :n_logical]


# ----------------------------------------------------------------------------
# PEFTNetDebug: wraps a tiny model whose Linear / Conv1D layers were replaced
# by the LoRA replacement module (apply_peft). forward() delegates to the
# wrapped (now-PEFT) model, exactly like the PyTorch class.
# ----------------------------------------------------------------------------
class PEFTNetDebugJAX:
    FACTORIZE_LIST = ["Linear", "Conv1D"]
    FAN_IN_FAN_OUT_MAP = {"Conv1D": True, "Linear": False}

    def __init__(self, raw_layers):
        # One-time "apply_peft" glue: present every frozen weight in (in, out)
        # layout, fold the LoRA scale into B, pad + cast matmul operands to
        # bf16 ONCE so the per-call jit only pads the activation.
        self.layers = [self._prepare(l) for l in raw_layers]
        cfgs = tuple(
            dict(n=l["n"], tn=l["tn"], tk=l["tk"], apply_relu=l["apply_relu"])
            for l in self.layers)
        n_layers = len(cfgs)

        def fwd(params, x):
            # TODO(synk): the two layers could be fused into one pallas_call
            # keeping the hidden activation in VMEM; kept per-layer for clarity.
            for idx, ((w_p, a_p, b_p, bias_p), cfg) in enumerate(zip(params, cfgs)):
                out_dtype = jnp.float32 if idx == n_layers - 1 else jnp.bfloat16
                x = lora_linear(x, w_p, a_p, b_p, bias_p,
                                n_logical=cfg["n"], tn=cfg["tn"], tk=cfg["tk"],
                                apply_relu=cfg["apply_relu"], out_dtype=out_dtype)
            return x

        self._jit_forward = jax.jit(fwd)

    @classmethod
    def _prepare(cls, layer):
        fifo = cls.FAN_IN_FAN_OUT_MAP[layer["type"]]
        w_kn = layer["W"] if fifo else layer["W"].T          # Linear stores (out, in)
        a_kr = layer["A"] if fifo else layer["A"].T          # Linear LoRA A is (r, in)
        b_rn = layer["B"] if fifo else layer["B"].T          # Linear LoRA B is (out, r)
        b_rn = b_rn * layer["scale"]                         # fold scale at build time

        K, N = w_kn.shape
        r = a_kr.shape[1]
        tk, Kp = _choose_tk(K)
        tn, Np = _choose_tn(N)

        return dict(
            w_p=_pad2d(jnp.asarray(w_kn, jnp.bfloat16), Kp, Np),
            a_p=_pad2d(jnp.asarray(a_kr, jnp.bfloat16), Kp, r),
            b_p=_pad2d(jnp.asarray(b_rn, jnp.bfloat16), r, Np),
            bias_p=_pad2d(jnp.asarray(layer["bias"], jnp.float32).reshape(1, N), 1, Np),
            k=K, n=N, tn=tn, tk=tk,
            apply_relu=(layer["activation"] == "relu"),
        )

    def _params(self):
        return tuple((l["w_p"], l["a_p"], l["b_p"], l["bias_p"])
                     for l in self.layers)

    def forward(self, x):
        # Matches PyTorch: forward(*args) -> self.peft_model(*args)
        return self._jit_forward(self._params(), x)

    __call__ = forward


# ----------------------------------------------------------------------------
# Pure-JAX reference (same bf16-quantized operands, f32 math).
# ----------------------------------------------------------------------------
def reference_forward(net, x):
    for l in net.layers:
        K, N = l["k"], l["n"]
        w = l["w_p"][:K, :N].astype(jnp.float32)
        a = l["a_p"][:K, :].astype(jnp.float32)
        b = l["b_p"][:, :N].astype(jnp.float32)
        bias = l["bias_p"][0, :N].astype(jnp.float32)
        xb = x.astype(jnp.bfloat16).astype(jnp.float32)
        y = xb @ w + (xb @ a) @ b + bias[None, :]
        if l["apply_relu"]:
            y = jnp.maximum(y, 0.0)
        x = y
    return x


# ----------------------------------------------------------------------------
# Deterministic parameter construction (synthetic, no checkpoint loading).
# ----------------------------------------------------------------------------
def build_peft_model(key, d_in, d_hidden, d_out, rank, lora_alpha=16.0):
    ks = jax.random.split(key, 8)
    scale = lora_alpha / rank

    # Layer 1: originally nn.Linear(d_in, d_hidden)  (fan_in_fan_out=False)
    layer1 = dict(
        type="Linear",
        W=jax.random.normal(ks[0], (d_hidden, d_in), jnp.float32) * 0.1,   # (out, in)
        bias=jax.random.normal(ks[1], (d_hidden,), jnp.float32) * 0.05,
        A=jax.random.normal(ks[2], (rank, d_in), jnp.float32) * 0.1,       # (r, in)
        B=jax.random.normal(ks[3], (d_hidden, rank), jnp.float32) * 0.1,   # (out, r)
        scale=scale,
        activation="relu",
    )
    # Layer 2: originally HF Conv1D(d_out, d_hidden)  (fan_in_fan_out=True)
    layer2 = dict(
        type="Conv1D",
        W=jax.random.normal(ks[4], (d_hidden, d_out), jnp.float32) * 0.1,  # (in, out)
        bias=jax.random.normal(ks[5], (d_out,), jnp.float32) * 0.05,
        A=jax.random.normal(ks[6], (d_hidden, rank), jnp.float32) * 0.1,   # (in, r)
        B=jax.random.normal(ks[7], (rank, d_out), jnp.float32) * 0.1,      # (r, out)
        scale=scale,
        activation="none",
    )
    return PEFTNetDebugJAX([layer1, layer2])


if __name__ == "__main__":
    key = jax.random.PRNGKey(0)
    k_params, k_x = jax.random.split(key)

    # Small, slightly uneven shapes to exercise the pad-to-(8,128) path.
    batch, d_in, d_hidden, d_out, rank = 8, 40, 56, 48, 8
    net = build_peft_model(k_params, d_in, d_hidden, d_out, rank)
    x = jax.random.normal(k_x, (batch, d_in), jnp.float32)

    out = jax.block_until_ready(net(x))
    ref = reference_forward(net, x)

    assert out.shape == (batch, d_out)
    assert jnp.allclose(out, ref, atol=2e-2, rtol=2e-2), "mismatch vs reference"

    # TODO(synk): get_report()/merge()/factorize() are module-surgery & pandas
    # bookkeeping with no kernel content; not translated.
    print("KERNEL_OK")
</pallas_src>

<mosaic_0001>
module attributes {stable_mosaic.version = 11 : i64} {
  func.func @_lora_linear_kernel(%arg0: i32, %arg1: i32, %arg2: i32, %arg3: memref<8x128xbf16, #tpu.memory_space<vmem>>, %arg4: memref<128x128xbf16, #tpu.memory_space<vmem>>, %arg5: memref<8x8xbf16, #tpu.memory_space<vmem>>, %arg6: memref<8x128xbf16, #tpu.memory_space<vmem>>, %arg7: memref<1x128xf32, #tpu.memory_space<vmem>>, %arg8: memref<8x128xbf16, #tpu.memory_space<vmem>>, %arg9: memref<8x128xf32, #tpu.memory_space<vmem>>) attributes {dimension_semantics = [#tpu.dimension_semantics<parallel>, #tpu.dimension_semantics<parallel>, #tpu.dimension_semantics<arbitrary>], iteration_bounds = array<i64: 1, 1, 1>, scalar_prefetch = 0 : i64, scratch_operands = 1 : i64, tpu.core_type = #tpu.core_type<tc>, window_params = [{transform_indices = @transform_0, window_bounds = array<i64: 8, 128>}, {transform_indices = @transform_1, window_bounds = array<i64: 128, 128>}, {transform_indices = @transform_2, window_bounds = array<i64: 8, 8>}, {transform_indices = @transform_3, window_bounds = array<i64: 8, 128>}, {transform_indices = @transform_4, window_bounds = array<i64: 1, 128>}, {transform_indices = @transform_5, window_bounds = array<i64: 8, 128>}]} {
    %c0_i32 = arith.constant 0 : i32
    %0 = arith.cmpi eq, %arg2, %c0_i32 : i32
    %1 = arith.extui %0 : i1 to i32
    %c0_i32_0 = arith.constant 0 : i32
    %2 = arith.cmpi ne, %1, %c0_i32_0 : i32
    scf.if %2 {
      %cst_10 = arith.constant 0.000000e+00 : f32
      %12 = vector.broadcast %cst_10 : f32 to vector<8x128xf32>
      %c0_11 = arith.constant 0 : index
      %c0_12 = arith.constant 0 : index
      %13 = vector.load %arg9[%c0_11, %c0_12] : memref<8x128xf32, #tpu.memory_space<vmem>>, vector<8x128xf32>
      tpu.vector_store %arg9[%c0_11, %c0_12], %12 {strides = array<i32>} : memref<8x128xf32, #tpu.memory_space<vmem>>, vector<8x128xf32>,
    } else {
    }
    %c0 = arith.constant 0 : index
    %c0_1 = arith.constant 0 : index
    %3 = vector.load %arg9[%c0, %c0_1] : memref<8x128xf32, #tpu.memory_space<vmem>>, vector<8x128xf32>
    %c0_2 = arith.constant 0 : index
    %c0_3 = arith.constant 0 : index
    %4 = vector.load %arg3[%c0_2, %c0_3] : memref<8x128xbf16, #tpu.memory_space<vmem>>, vector<8x128xbf16>
    %c0_4 = arith.constant 0 : index
    %c0_5 = arith.constant 0 : index
    %5 = vector.load %arg4[%c0_4, %c0_5] : memref<128x128xbf16, #tpu.memory_space<vmem>>, vector<128x128xbf16>
    %cst = arith.constant dense<0.000000e+00> : vector<8x128xf32>
    %6 = tpu.matmul %4, %5, %cst {dimension_numbers = #tpu.dot_dimension_numbers<[1], [0], [0], [1], [0, 0, 1, 1], [], []>} : vector<8x128xbf16>, vector<128x128xbf16>, vector<8x128xf32> -> vector<8x128xf32>
    %7 = arith.addf %3, %6 : vector<8x128xf32>
    %c0_6 = arith.constant 0 : index
    %c0_7 = arith.constant 0 : index
    %8 = vector.load %arg9[%c0_6, %c0_7] : memref<8x128xf32, #tpu.memory_space<vmem>>, vector<8x128xf32>
    tpu.vector_store %arg9[%c0_6, %c0_7], %7 {strides = array<i32>} : memref<8x128xf32, #tpu.memory_space<vmem>>, vector<8x128xf32>,
    %c0_i32_8 = arith.constant 0 : i32
    %9 = arith.cmpi eq, %arg2, %c0_i32_8 : i32
    %10 = arith.extui %9 : i1 to i32
    %c0_i32_9 = arith.constant 0 : i32
    %11 = arith.cmpi ne, %10, %c0_i32_9 : i32
    scf.if %11 {
      %c0_10 = arith.constant 0 : index
      %c0_11 = arith.constant 0 : index
      %12 = vector.load %arg5[%c0_10, %c0_11] : memref<8x8xbf16, #tpu.memory_space<vmem>>, vector<8x8xbf16>
      %c0_12 = arith.constant 0 : index
      %c0_13 = arith.constant 0 : index
      %13 = vector.load %arg6[%c0_12, %c0_13] : memref<8x128xbf16, #tpu.memory_space<vmem>>, vector<8x128xbf16>
      %cst_14 = arith.constant dense<0.000000e+00> : vector<8x128xf32>
      %14 = tpu.matmul %12, %13, %cst_14 {dimension_numbers = #tpu.dot_dimension_numbers<[1], [0], [0], [1], [0, 0, 1, 1], [], []>} : vector<8x8xbf16>, vector<8x128xbf16>, vector<8x128xf32> -> vector<8x128xf32>
      %c0_15 = arith.constant 0 : index
      %c0_16 = arith.constant 0 : index
      %15 = vector.load %arg9[%c0_15, %c0_16] : memref<8x128xf32, #tpu.memory_space<vmem>>, vector<8x128xf32>
      %16 = arith.addf %15, %14 : vector<8x128xf32>
      %c0_17 = arith.constant 0 : index
      %c0_18 = arith.constant 0 : index
      %17 = vector.load %arg7[%c0_17, %c0_18] : memref<1x128xf32, #tpu.memory_space<vmem>>, vector<1x128xf32>
      %18 = vector.broadcast %17 : vector<1x128xf32> to vector<8x128xf32>
      %19 = arith.addf %16, %18 : vector<8x128xf32>
      %cst_19 = arith.constant 0.000000e+00 : f32
      %20 = vector.broadcast %cst_19 : f32 to vector<8x128xf32>
      %21 = arith.maximumf %19, %20 : vector<8x128xf32>
      %22 = arith.truncf %21 : vector<8x128xf32> to vector<8x128xbf16>
      %c0_20 = arith.constant 0 : index
      %c0_21 = arith.constant 0 : index
      %23 = vector.load %arg8[%c0_20, %c0_21] : memref<8x128xbf16, #tpu.memory_space<vmem>>, vector<8x128xbf16>
      tpu.vector_store %arg8[%c0_20, %c0_21], %22 {strides = array<i32>} : memref<8x128xbf16, #tpu.memory_space<vmem>>, vector<8x128xbf16>,
    } else {
    }
    return
  }
  func.func @transform_0(%arg0: i32, %arg1: i32, %arg2: i32) -> (i32, i32) {
    %c0_i32 = arith.constant 0 : i32
    return %arg0, %arg2 : i32, i32
  }
  func.func @transform_1(%arg0: i32, %arg1: i32, %arg2: i32) -> (i32, i32) {
    %c0_i32 = arith.constant 0 : i32
    return %arg2, %arg1 : i32, i32
  }
  func.func @transform_2(%arg0: i32, %arg1: i32, %arg2: i32) -> (i32, i32) {
    %c0_i32 = arith.constant 0 : i32
    %c0_i32_0 = arith.constant 0 : i32
    return %arg0, %c0_i32 : i32, i32
  }
  func.func @transform_3(%arg0: i32, %arg1: i32, %arg2: i32) -> (i32, i32) {
    %c0_i32 = arith.constant 0 : i32
    %c0_i32_0 = arith.constant 0 : i32
    return %c0_i32, %arg1 : i32, i32
  }
  func.func @transform_4(%arg0: i32, %arg1: i32, %arg2: i32) -> (i32, i32) {
    %c0_i32 = arith.constant 0 : i32
    %c0_i32_0 = arith.constant 0 : i32
    return %c0_i32, %arg1 : i32, i32
  }
  func.func @transform_5(%arg0: i32, %arg1: i32, %arg2: i32) -> (i32, i32) {
    %c0_i32 = arith.constant 0 : i32
    return %arg0, %arg1 : i32, i32
  }
}

module attributes {stable_mosaic.version = 11 : i64} {
  func.func @_lora_linear_kernel(%arg0: i32, %arg1: i32, %arg2: i32, %arg3: memref<8x128xbf16, #tpu.memory_space<vmem>>, %arg4: memref<128x128xbf16, #tpu.memory_space<vmem>>, %arg5: memref<8x8xbf16, #tpu.memory_space<vmem>>, %arg6: memref<8x128xbf16, #tpu.memory_space<vmem>>, %arg7: memref<1x128xf32, #tpu.memory_space<vmem>>, %arg8: memref<8x128xf32, #tpu.memory_space<vmem>>, %arg9: memref<8x128xf32, #tpu.memory_space<vmem>>) attributes {dimension_semantics = [#tpu.dimension_semantics<parallel>, #tpu.dimension_semantics<parallel>, #tpu.dimension_semantics<arbitrary>], iteration_bounds = array<i64: 1, 1, 1>, scalar_prefetch = 0 : i64, scratch_operands = 1 : i64, tpu.core_type = #tpu.core_type<tc>, window_params = [{transform_indices = @transform_0, window_bounds = array<i64: 8, 128>}, {transform_indices = @transform_1, window_bounds = array<i64: 128, 128>}, {transform_indices = @transform_2, window_bounds = array<i64: 8, 8>}, {transform_indices = @transform_3, window_bounds = array<i64: 8, 128>}, {transform_indices = @transform_4, window_bounds = array<i64: 1, 128>}, {transform_indices = @transform_5, window_bounds = array<i64: 8, 128>}]} {
    %c0_i32 = arith.constant 0 : i32
    %0 = arith.cmpi eq, %arg2, %c0_i32 : i32
    %1 = arith.extui %0 : i1 to i32
    %c0_i32_0 = arith.constant 0 : i32
    %2 = arith.cmpi ne, %1, %c0_i32_0 : i32
    scf.if %2 {
      %cst_10 = arith.constant 0.000000e+00 : f32
      %12 = vector.broadcast %cst_10 : f32 to vector<8x128xf32>
      %c0_11 = arith.constant 0 : index
      %c0_12 = arith.constant 0 : index
      %13 = vector.load %arg9[%c0_11, %c0_12] : memref<8x128xf32, #tpu.memory_space<vmem>>, vector<8x128xf32>
      tpu.vector_store %arg9[%c0_11, %c0_12], %12 {strides = array<i32>} : memref<8x128xf32, #tpu.memory_space<vmem>>, vector<8x128xf32>,
    } else {
    }
    %c0 = arith.constant 0 : index
    %c0_1 = arith.constant 0 : index
    %3 = vector.load %arg9[%c0, %c0_1] : memref<8x128xf32, #tpu.memory_space<vmem>>, vector<8x128xf32>
    %c0_2 = arith.constant 0 : index
    %c0_3 = arith.constant 0 : index
    %4 = vector.load %arg3[%c0_2, %c0_3] : memref<8x128xbf16, #tpu.memory_space<vmem>>, vector<8x128xbf16>
    %c0_4 = arith.constant 0 : index
    %c0_5 = arith.constant 0 : index
    %5 = vector.load %arg4[%c0_4, %c0_5] : memref<128x128xbf16, #tpu.memory_space<vmem>>, vector<128x128xbf16>
    %cst = arith.constant dense<0.000000e+00> : vector<8x128xf32>
    %6 = tpu.matmul %4, %5, %cst {dimension_numbers = #tpu.dot_dimension_numbers<[1], [0], [0], [1], [0, 0, 1, 1], [], []>} : vector<8x128xbf16>, vector<128x128xbf16>, vector<8x128xf32> -> vector<8x128xf32>
    %7 = arith.addf %3, %6 : vector<8x128xf32>
    %c0_6 = arith.constant 0 : index
    %c0_7 = arith.constant 0 : index
    %8 = vector.load %arg9[%c0_6, %c0_7] : memref<8x128xf32, #tpu.memory_space<vmem>>, vector<8x128xf32>
    tpu.vector_store %arg9[%c0_6, %c0_7], %7 {strides = array<i32>} : memref<8x128xf32, #tpu.memory_space<vmem>>, vector<8x128xf32>,
    %c0_i32_8 = arith.constant 0 : i32
    %9 = arith.cmpi eq, %arg2, %c0_i32_8 : i32
    %10 = arith.extui %9 : i1 to i32
    %c0_i32_9 = arith.constant 0 : i32
    %11 = arith.cmpi ne, %10, %c0_i32_9 : i32
    scf.if %11 {
      %c0_10 = arith.constant 0 : index
      %c0_11 = arith.constant 0 : index
      %12 = vector.load %arg5[%c0_10, %c0_11] : memref<8x8xbf16, #tpu.memory_space<vmem>>, vector<8x8xbf16>
      %c0_12 = arith.constant 0 : index
      %c0_13 = arith.constant 0 : index
      %13 = vector.load %arg6[%c0_12, %c0_13] : memref<8x128xbf16, #tpu.memory_space<vmem>>, vector<8x128xbf16>
      %cst_14 = arith.constant dense<0.000000e+00> : vector<8x128xf32>
      %14 = tpu.matmul %12, %13, %cst_14 {dimension_numbers = #tpu.dot_dimension_numbers<[1], [0], [0], [1], [0, 0, 1, 1], [], []>} : vector<8x8xbf16>, vector<8x128xbf16>, vector<8x128xf32> -> vector<8x128xf32>
      %c0_15 = arith.constant 0 : index
      %c0_16 = arith.constant 0 : index
      %15 = vector.load %arg9[%c0_15, %c0_16] : memref<8x128xf32, #tpu.memory_space<vmem>>, vector<8x128xf32>
      %16 = arith.addf %15, %14 : vector<8x128xf32>
      %c0_17 = arith.constant 0 : index
      %c0_18 = arith.constant 0 : index
      %17 = vector.load %arg7[%c0_17, %c0_18] : memref<1x128xf32, #tpu.memory_space<vmem>>, vector<1x128xf32>
      %18 = vector.broadcast %17 : vector<1x128xf32> to vector<8x128xf32>
      %19 = arith.addf %16, %18 : vector<8x128xf32>
      %c0_19 = arith.constant 0 : index
      %c0_20 = arith.constant 0 : index
      %20 = vector.load %arg8[%c0_19, %c0_20] : memref<8x128xf32, #tpu.memory_space<vmem>>, vector<8x128xf32>
      tpu.vector_store %arg8[%c0_19, %c0_20], %19 {strides = array<i32>} : memref<8x128xf32, #tpu.memory_space<vmem>>, vector<8x128xf32>,
    } else {
    }
    return
  }
  func.func @transform_0(%arg0: i32, %arg1: i32, %arg2: i32) -> (i32, i32) {
    %c0_i32 = arith.constant 0 : i32
    return %arg0, %arg2 : i32, i32
  }
  func.func @transform_1(%arg0: i32, %arg1: i32, %arg2: i32) -> (i32, i32) {
    %c0_i32 = arith.constant 0 : i32
    return %arg2, %arg1 : i32, i32
  }
  func.func @transform_2(%arg0: i32, %arg1: i32, %arg2: i32) -> (i32, i32) {
    %c0_i32 = arith.constant 0 : i32
    %c0_i32_0 = arith.constant 0 : i32
    return %arg0, %c0_i32 : i32, i32
  }
  func.func @transform_3(%arg0: i32, %arg1: i32, %arg2: i32) -> (i32, i32) {
    %c0_i32 = arith.constant 0 : i32
    %c0_i32_0 = arith.constant 0 : i32
    return %c0_i32, %arg1 : i32, i32
  }
  func.func @transform_4(%arg0: i32, %arg1: i32, %arg2: i32) -> (i32, i32) {
    %c0_i32 = arith.constant 0 : i32
    %c0_i32_0 = arith.constant 0 : i32
    return %c0_i32, %arg1 : i32, i32
  }
  func.func @transform_5(%arg0: i32, %arg1: i32, %arg2: i32) -> (i32, i32) {
    %c0_i32 = arith.constant 0 : i32
    return %arg0, %arg1 : i32, i32
  }
}

</mosaic_0001>

<bundles_post_ra>
// kernel: fwd.2
= control target key start
LH: loop header
LB: loop body
LE: loop exit
PB: predicated region body
PF: predicated region fallthrough
CT: control target
= control target key end

     0   :  { %10 = vsyncpa [#allocation4], 0  ;;  %s235_s21 = smov [#allocation3]   ;;  %s236_s23 = smov 64   ;;  %s286_s0 = inlined_call_operand.vmem [shape: bf16[8,128], index: 0, kind: input, shape index: {}]   ;;  %s287_s1 = inlined_call_operand.hbm [shape: bf16[128,128], index: 1, kind: input, shape index: {}]   ;;  %s288_s2 = inlined_call_operand.vmem [shape: bf16[8,8], index: 2, kind: input, shape index: {}]   ;;  %s289_s3 = inlined_call_operand.vmem [shape: bf16[8,128], index: 3, kind: input, shape index: {}]   ;;  %s290_s4 = inlined_call_operand.vmem [shape: f32[1,128], index: 4, kind: input, shape index: {}]   ;;  %s291_s5 = inlined_call_operand.vmem [shape: bf16[8,128], index: 5, kind: output, shape index: {}]  }
   0x1   :  { %s17_s20 = sshll.u32 %s287_s1, 4  ;;  %s19_s22 = sshll.u32 %s235_s21, 4  ;;  %s18_s20 = int_to_ptr.hbm [resolvable:$true] %s17_s20  ;;  %s20_s22 = int_to_ptr.vmem [resolvable:$true] %s19_s22 }
   0x2   :  { %s237_s24 = smov 4  }
   0x3   :  { %25 = dma.hbm_to_vmem [thread:$0]  %s18_s20, 1024, %s20_s22, [#allocation4], %s236_s23, %s236_s23, %s237_s24  }
   0x4   :  { %233 = dma.done.wait [#allocation4], 1024  }
   0x5   :  { %234 = vsyncadd [#allocation4], 4294966272  ;;  %v204_v0 = vld [vmem:[#allocation3 + $0x38] sm:$0xff]  ;;  %vm132_vm0 = vcmask 1043456   ;;  %v203_v1 = vld [vmem:[#allocation3 + $0x30] sm:$0xff]  ;;  %vm128_vm1 = vcmask 64512  }
   0x6   :  { %108 = vmatpush.bf16.msra.mxu0 %v204_v0  ;;  %v127_v2 = vld [vmem:[%s289_s3] sm:$0xf]  ;;  %v202_v5 = vld [vmem:[#allocation3 + $0x28] sm:$0xff]  ;;  %v200_v7 = vld [vmem:[#allocation3 + $0x18] sm:$0xff] }
   0x7   :  { %v134_v3 = vsel %vm132_vm0, %v127_v2, 0  ;;  %v126_v4 = vld [vmem:[%s288_s2] sm:$0xf]  ;;  %v199_v8 = vld [vmem:[#allocation3 + $0x10] sm:$0xff]  ;;  %v198_v9 = vld [vmem:[#allocation3 + $0x8] sm:$0xff] }
   0x8   :  { %143 = vmatpush.bf16.msra.mxu1 %v134_v3  ;;  %v201_v6 = vld [vmem:[#allocation3 + $0x20] sm:$0xff] }
   0x9   :  { %v197_v10 = vld [vmem:[#allocation3] sm:$0xff] }
   0xa   :  { %109 = vmatpush.bf16.msra.mxu0 %v203_v1  ;;  %v43_v11 = vld [vmem:[%s286_s0] sm:$0xf] }
   0xb   :  { %196 = vmatmul.msk.bf16.vlgmr.msra.gmra.mxu1 %vm128_vm1, %v126_v4  ;;  %v208_v14 = vld [vmem:[%s290_s4] ss:$0 sm:$0xff] }
   0xe   :  { %110 = vmatpush.bf16.msra.mxu0 %v202_v5 }
  0x12   :  { %111 = vmatpush.bf16.msra.mxu0 %v201_v6 }
  0x16   :  { %112 = vmatpush.bf16.msra.mxu0 %v200_v7 }
  0x1a   :  { %113 = vmatpush.bf16.msra.mxu0 %v199_v8 }
  0x1e   :  { %114 = vmatpush.bf16.msra.mxu0 %v198_v9 }
  0x22   :  { %115 = vmatpush.bf16.msra.mxu0 %v197_v10 }
  0x25   :  { %116 = vmatmul.bf16.vlgmr.msra.gmra.mxu0 %v43_v11 }
  0x88   :  { %v145_v12 = vpop.f32.mrf.mxu1 }
  0x90   :  { %v147_v13 = vpop.f32.mrf.mxu1 }
  0xa2   :  { %v117_v15 = vpop.f32.mrf.mxu0 }
  0xa3   :  { %v150_v16 = vadd.f32 %v145_v12, %v117_v15 }
  0xa5   :  { %v155_v17 = vadd.f32 %v208_v14, %v150_v16 }
  0xa7   :  { %v156_v18 = vmax.f32 %v155_v17, 0.0 }
  0xa9   :  { %v157_v19 = vpack.c.bf16 %v156_v18, %v156_v18 }
  0xaa   :  { %v119_v20 = vpop.f32.mrf.mxu0 }
  0xab   :  { %158 = vst [vmem:[%s291_s5] sm:$0xf] %v157_v19 }
  0xac   :  { %163 = vsyncpa [#allocation4], 1 }

// kernel: fwd.3
= control target key start
LH: loop header
LB: loop body
LE: loop exit
PB: predicated region body
PF: predicated region fallthrough
CT: control target
= control target key end

     0   :  { %10 = vsyncpa [#allocation4], 0  ;;  %s325_s0 = inlined_call_operand.vmem [shape: bf16[8,128], index: 0, kind: input, shape index: {}]   ;;  %s326_s1 = inlined_call_operand.hbm [shape: bf16[128,128], index: 1, kind: input, shape index: {}]   ;;  %s327_s2 = inlined_call_operand.vmem [shape: bf16[8,8], index: 2, kind: input, shape index: {}]   ;;  %s328_s3 = inlined_call_operand.vmem [shape: bf16[8,128], index: 3, kind: input, shape index: {}]   ;;  %s329_s4 = inlined_call_operand.vmem [shape: f32[1,128], index: 4, kind: input, shape index: {}]   ;;  %s330_s5 = inlined_call_operand.hbm [shape: f32[8,128], index: 5, kind: output, shape index: {}]  }
   0x1   :  { %11 = vsyncpa [#allocation5], 0  ;;  %s18_s20 = sshll.u32 %s326_s1, 4  ;;  %s273_s21 = smov [#allocation3]   ;;  %s19_s20 = int_to_ptr.hbm [resolvable:$true] %s18_s20 }
   0x2   :  { %s20_s22 = sshll.u32 %s273_s21, 4  ;;  %s274_s23 = smov 64   ;;  %s21_s22 = int_to_ptr.vmem [resolvable:$true] %s20_s22 }
   0x3   :  { %s275_s24 = smov 4  }
   0x4   :  { %26 = dma.hbm_to_vmem [thread:$0]  %s19_s20, 1024, %s21_s22, [#allocation4], %s274_s23, %s274_s23, %s275_s24  }
   0x5   :  { %269 = dma.done.wait [#allocation4], 1024  }
   0x6   :  { %270 = vsyncadd [#allocation4], 4294966272  ;;  %v215_v0 = vld [vmem:[#allocation3 + $0x38] sm:$0xff]  ;;  %vm133_vm0 = vcmask 1043456   ;;  %v214_v1 = vld [vmem:[#allocation3 + $0x30] sm:$0xff]  ;;  %vm129_vm1 = vcmask 64512  }
   0x7   :  { %109 = vmatpush.bf16.msra.mxu0 %v215_v0  ;;  %v128_v2 = vld [vmem:[%s328_s3] sm:$0xf]  ;;  %v213_v5 = vld [vmem:[#allocation3 + $0x28] sm:$0xff]  ;;  %v211_v7 = vld [vmem:[#allocation3 + $0x18] sm:$0xff]  ;;  %s276_s30 = smov [#allocation6]   ;;  %s165_s9 = sshll.u32 %s330_s5, 4  ;;  %s166_s9 = int_to_ptr.hbm [resolvable:$true] %s165_s9 }
   0x8   :  { %v135_v3 = vsel %vm133_vm0, %v128_v2, 0  ;;  %v127_v4 = vld [vmem:[%s327_s2] sm:$0xf]  ;;  %v210_v8 = vld [vmem:[#allocation3 + $0x10] sm:$0xff]  ;;  %v209_v9 = vld [vmem:[#allocation3 + $0x8] sm:$0xff]  ;;  %s163_s6 = sshll.u32 %s276_s30, 4  ;;  %s164_s6 = int_to_ptr.vmem [resolvable:$true] %s163_s6 }
   0x9   :  { %144 = vmatpush.bf16.msra.mxu1 %v135_v3  ;;  %v212_v6 = vld [vmem:[#allocation3 + $0x20] sm:$0xff] }
   0xa   :  { %v208_v10 = vld [vmem:[#allocation3] sm:$0xff] }
   0xb   :  { %110 = vmatpush.bf16.msra.mxu0 %v214_v1  ;;  %v44_v11 = vld [vmem:[%s325_s0] sm:$0xf] }
   0xc   :  { %207 = vmatmul.msk.bf16.vlgmr.msra.gmra.mxu1 %vm129_vm1, %v127_v4  ;;  %v220_v14 = vld [vmem:[%s329_s4] ss:$0 sm:$0xff] }
   0xf   :  { %111 = vmatpush.bf16.msra.mxu0 %v213_v5 }
  0x13   :  { %112 = vmatpush.bf16.msra.mxu0 %v212_v6 }
  0x17   :  { %113 = vmatpush.bf16.msra.mxu0 %v211_v7 }
  0x1b   :  { %114 = vmatpush.bf16.msra.mxu0 %v210_v8 }
  0x1f   :  { %115 = vmatpush.bf16.msra.mxu0 %v209_v9 }
  0x23   :  { %116 = vmatpush.bf16.msra.mxu0 %v208_v10 }
  0x26   :  { %117 = vmatmul.bf16.vlgmr.msra.gmra.mxu0 %v44_v11 }
  0x89   :  { %v146_v12 = vpop.f32.mrf.mxu1 }
  0x91   :  { %v148_v13 = vpop.f32.mrf.mxu1 }
  0xa3   :  { %v118_v15 = vpop.f32.mrf.mxu0 }
  0xa4   :  { %v151_v16 = vadd.f32 %v146_v12, %v118_v15 }
  0xa6   :  { %v156_v17 = vadd.f32 %v220_v14, %v151_v16 }
  0xa8   :  { %157 = vst [vmem:[#allocation6] sm:$0xff] %v156_v17 }
  0xa9   :  { %168 = dma.vmem_to_hbm [thread:$0]  %s164_s6, 128, %s166_s9, [#allocation5]  }
  0xab   :  { %v120_v18 = vpop.f32.mrf.mxu0 }
  0xac   :  { %271 = dma.done.wait [#allocation5], 128  }
  0xad   :  { %272 = vsyncadd [#allocation5], 4294967168 }
  0xae   :  { %173 = vsyncpa [#allocation4], 1 }
  0xaf   :  { %174 = vsyncpa [#allocation5], 1 }

</bundles_post_ra>
